<compile_context>
chip_gen: v6e
topology: v6e:2x2x1
jax: 0.10.0
libtpu: 0.0.40
codegen_flags: <defaults>
</compile_context>

<pallas_src>
from functools import partial

import jax
import jax.numpy as jnp
from jax import lax
from jax.experimental import pallas as pl
from jax.experimental.pallas import tpu as pltpu


# ---------------------------------------------------------------------------
# Kernels
# ---------------------------------------------------------------------------

def _cam_single_kernel(gamma_ref, x_ref, o_ref):
    """grid = (B,): the whole (C, Np) slab of one batch element is VMEM-resident.

    x is read from HBM once and the output written once; Gram, stable
    softmax(-E) and the attention apply all run on the resident block.
    """
    x = x_ref[0]                                        # (C, Np), native dtype
    # Gram: contract the last dims of both operands (x @ x^T) -- no explicit
    # transpose is materialized in the kernel body.
    # TODO(synk): per review, grep the bundle for vxpose to confirm the
    # transposed-RHS form lowers without an XLU transpose on all generations.
    energy = lax.dot_general(
        x, x, dimension_numbers=(((1,), (1,)), ((), ())),
        preferred_element_type=jnp.float32)             # (C, C) f32
    # softmax(rowmax(E) - E) == softmax(-E); shifting by row-min(E) makes the
    # largest exponent exactly 0 -> numerically stable with one reduction.
    shifted = jnp.min(energy, axis=-1, keepdims=True) - energy
    p = jnp.exp(shifted)
    attn = (p / jnp.sum(p, axis=-1, keepdims=True)).astype(x.dtype)
    out = jnp.dot(attn, x, preferred_element_type=jnp.float32)
    o_ref[0] = (gamma_ref[0] * out + x.astype(jnp.float32)).astype(o_ref.dtype)


def _cam_tiled_kernel(gamma_ref, x_ref, o_ref, energy_ref, attn_ref, *cache,
                      cache_x):
    """grid = (B, 2 phases, n_tiles).

    phase 0              : energy[C,C] (+)= x_tile @ x_tile^T  (f32 accum),
                           and (if cache_x) copy the tile into the VMEM cache.
    phase 1, n_tile == 0 : attn = softmax(-energy) into scratch.
    phase 1              : out_tile = gamma * (attn @ x_tile) + x_tile, with
                           x_tile taken from the VMEM cache when cache_x so x
                           is only streamed from HBM once per batch element.
    """
    phase = pl.program_id(1)
    n = pl.program_id(2)
    tn = x_ref.shape[-1]

    @pl.when(phase == 0)
    def _gram():
        x = x_ref[0]                                    # (C, TN)
        g = lax.dot_general(
            x, x, dimension_numbers=(((1,), (1,)), ((), ())),
            preferred_element_type=jnp.float32)

        @pl.when(n == 0)
        def _():                            # overwrite: no zeros-init pass
            energy_ref[...] = g

        @pl.when(n != 0)
        def _():
            energy_ref[...] += g

        if cache_x:
            off = pl.multiple_of(n * tn, 128)
            cache[0][:, pl.ds(off, tn)] = x

    @pl.when(jnp.logical_and(phase == 1, n == 0))
    def _softmax():
        e = energy_ref[...]                             # (C, C) f32
        shifted = jnp.min(e, axis=-1, keepdims=True) - e
        p = jnp.exp(shifted)
        # Exact divide: runs once per batch element; effectively free.
        attn_ref[...] = (p / jnp.sum(p, axis=-1, keepdims=True)
                         ).astype(attn_ref.dtype)

    @pl.when(phase == 1)
    def _apply():
        if cache_x:
            off = pl.multiple_of(n * tn, 128)
            x = cache[0][:, pl.ds(off, tn)]
        else:
            x = x_ref[0]
        out = jnp.dot(attn_ref[...], x, preferred_element_type=jnp.float32)
        o_ref[0] = (gamma_ref[0] * out + x.astype(jnp.float32)
                    ).astype(o_ref.dtype)


# ---------------------------------------------------------------------------
# Planning (generation-aware VMEM budget, mode dispatch, tile size)
# ---------------------------------------------------------------------------

def _vmem_limit_bytes():
    """Scoped-VMEM budget = 3/4 of the physical per-core VMEM."""
    cap = 0
    try:
        cap = int(getattr(pltpu.get_tpu_info(), "vmem_capacity_bytes", 0) or 0)
    except Exception:
        cap = 0
    if cap <= 0:
        cap = 64 * 1024 * 1024          # conservative fallback (v7x-sized VMEM)
    return (cap * 3) // 4               # ~96 MiB on v5e/v6e, ~48 MiB on v7x


def _plan(N, C, itemsize, vmem_limit, mode=None, tile_n=None):
    """Pick (mode, TN, Np): execution mode, spatial tile, padded spatial size.

    Costs are counted per group of 128 lanes so that tile/cache sizing and the
    single-slab decision share the same units.
    """
    g = -(-N // 128)                       # 128-lane column groups after padding
    col_io = 4 * itemsize * 128 * C        # 2 input + 2 output double-buffers
    col_tmp = 12 * 128 * C                 # f32 intermediates of the apply phase
    col_tile = col_io + col_tmp
    col_cache = itemsize * 128 * C         # VMEM-resident x cache
    fixed = 6 * C * C * 4                  # energy + attention scratch + temps
    avail = max(vmem_limit - fixed, col_tile)

    if mode is None:
        if g * col_tile <= avail:
            mode = "single"                # whole slab per batch, x read once
        elif g * col_cache + col_tile <= avail:
            mode = "cached"                # two-phase, x cached in VMEM
        else:
            mode = "stream"                # two-phase, x streamed twice

    if mode == "single":
        return mode, g * 128, g * 128

    if tile_n is not None:
        t = tile_n // 128
    elif mode == "cached":
        t = (avail - g * col_cache) // (col_cache + col_tile)
    else:
        t = avail // col_tile
    t = max(1, min(t, g))
    if mode == "cached" and tile_n is None:
        while t > 1 and (-(-g // t) * t) * col_cache + t * col_tile > avail:
            t -= 1
    return mode, t * 128, -(-g // t) * t * 128


# ---------------------------------------------------------------------------
# Wrapper
# ---------------------------------------------------------------------------

@partial(jax.jit, static_argnames=("mode", "tile_n"))
def cam_module(x, gamma, mode=None, tile_n=None):
    """Channel attention forward.  x: (B, C, H, W); gamma: (1,) f32."""
    B, C, H, W = x.shape
    N = H * W
    itemsize = x.dtype.itemsize
    vlim = _vmem_limit_bytes()
    mode, TN, Np = _plan(N, C, itemsize, vlim, mode=mode, tile_n=tile_n)

    x3 = x.reshape(B, C, N)
    if Np != N:
        # Zero columns contribute exactly 0 to the Gram matrix and the padded
        # output columns are sliced off below, so padding is semantics-free.
        x3 = jnp.pad(x3, ((0, 0), (0, 0), (0, Np - N)))

    if mode == "single":
        out3 = pl.pallas_call(
            _cam_single_kernel,
            out_shape=jax.ShapeDtypeStruct((B, C, Np), x.dtype),
            grid_spec=pltpu.PrefetchScalarGridSpec(
                num_scalar_prefetch=0,
                grid=(B,),
                in_specs=[
                    pl.BlockSpec(memory_space=pltpu.SMEM),          # gamma
                    pl.BlockSpec((1, C, Np), lambda b: (b, 0, 0)),  # x slab
                ],
                out_specs=pl.BlockSpec((1, C, Np), lambda b: (b, 0, 0)),
            ),
            compiler_params=pltpu.CompilerParams(
                dimension_semantics=("parallel",),
                vmem_limit_bytes=vlim,
            ),
        )(gamma, x3)
    else:
        cache_x = (mode == "cached")
        n_tiles = Np // TN
        scratch = [pltpu.VMEM((C, C), jnp.float32),    # energy accumulator
                   pltpu.VMEM((C, C), x.dtype)]        # attention (MXU dtype)
        if cache_x:
            scratch.append(pltpu.VMEM((C, Np), x.dtype))
            # Phase 1 pins the x window on tile 0 -> no per-tile re-DMA of x.
            x_map = lambda b, p, n: (b, 0, n * (1 - p))
        else:
            x_map = lambda b, p, n: (b, 0, n)
        out3 = pl.pallas_call(
            partial(_cam_tiled_kernel, cache_x=cache_x),
            out_shape=jax.ShapeDtypeStruct((B, C, Np), x.dtype),
            grid_spec=pltpu.PrefetchScalarGridSpec(
                num_scalar_prefetch=0,
                grid=(B, 2, n_tiles),
                in_specs=[
                    pl.BlockSpec(memory_space=pltpu.SMEM),          # gamma
                    pl.BlockSpec((1, C, TN), x_map),                # x tiles
                ],
                # Phase 0 never writes the output: park the output window on
                # tile 0 (n*p == 0) so no garbage block is ever flushed; the
                # only HBM writes are the lane-dense phase-1 tiles.
                out_specs=pl.BlockSpec((1, C, TN),
                                       lambda b, p, n: (b, 0, n * p)),
                scratch_shapes=scratch,
            ),
            compiler_params=pltpu.CompilerParams(
                dimension_semantics=("parallel", "arbitrary", "arbitrary"),
                vmem_limit_bytes=vlim,
            ),
        )(gamma, x3)

    if Np != N:
        out3 = out3[:, :, :N]
    return out3.reshape(B, C, H, W)


# ---------------------------------------------------------------------------
# Pure-JAX reference (matches the PyTorch forward)
# ---------------------------------------------------------------------------

def cam_module_ref(x, gamma):
    B, C, H, W = x.shape
    xf = x.reshape(B, C, H * W).astype(jnp.float32)
    energy = jnp.einsum("bcn,bdn->bcd", xf, xf)
    energy_new = jnp.max(energy, axis=-1, keepdims=True) - energy
    attention = jax.nn.softmax(energy_new, axis=-1)
    out = jnp.einsum("bcd,bdn->bcn", attention, xf).reshape(B, C, H, W)
    return (gamma[0] * out + x.astype(jnp.float32)).astype(x.dtype)


if __name__ == "__main__":
    key = jax.random.PRNGKey(0)
    B, C, H, W = 2, 4, 16, 16
    x = jax.random.normal(key, (B, C, H, W), dtype=jnp.float32)

    gamma0 = jnp.zeros((1,), dtype=jnp.float32)   # Parameter(torch.zeros(1))
    gamma1 = jnp.array([0.5], dtype=jnp.float32)

    ref0 = cam_module_ref(x, gamma0)
    ref1 = cam_module_ref(x, gamma1)

    # Auto-dispatched path (single VMEM-resident slab per batch element here).
    out0 = jax.block_until_ready(cam_module(x, gamma0))
    assert out0.shape == (B, C, H, W)
    assert jnp.allclose(out0, ref0, atol=1e-5, rtol=1e-5), "mismatch (gamma=0)"

    out1 = jax.block_until_ready(cam_module(x, gamma1))
    assert jnp.allclose(out1, ref1, atol=1e-3, rtol=1e-3), "mismatch (gamma=0.5)"

    # Exercise the tiled fallbacks (VMEM-cached and HBM-streaming) as well,
    # forced to 2 spatial tiles so the accumulation path is covered.
    for forced in ("cached", "stream"):
        outm = jax.block_until_ready(
            cam_module(x, gamma1, mode=forced, tile_n=128))
        assert jnp.allclose(outm, ref1, atol=1e-3, rtol=1e-3), \
            f"mismatch ({forced})"

    print("KERNEL_OK")
</pallas_src>

<mosaic_0001>
module attributes {stable_mosaic.version = 11 : i64} {
  func.func @_cam_single_kernel(%arg0: i32, %arg1: memref<1xf32, #tpu.memory_space<smem>>, %arg2: memref<1x4x256xf32, #tpu.memory_space<vmem>>, %arg3: memref<1x4x256xf32, #tpu.memory_space<vmem>>) attributes {dimension_semantics = [#tpu.dimension_semantics<parallel>], iteration_bounds = array<i64: 2>, scalar_prefetch = 0 : i64, scratch_operands = 0 : i64, tpu.core_type = #tpu.core_type<tc>, window_params = [{transform_indices = @transform_0, window_bounds = array<i64: 1>}, {transform_indices = @transform_1, window_bounds = array<i64: 1, 4, 256>}, {transform_indices = @transform_2, window_bounds = array<i64: 1, 4, 256>}]} {
    %c0 = arith.constant 0 : index
    %c0_0 = arith.constant 0 : index
    %c0_1 = arith.constant 0 : index
    %0 = vector.load %arg2[%c0, %c0_0, %c0_1] : memref<1x4x256xf32, #tpu.memory_space<vmem>>, vector<1x4x256xf32>
    %1 = vector.shape_cast %0 : vector<1x4x256xf32> to vector<4x256xf32>
    %cst = arith.constant dense<0.000000e+00> : vector<4x4xf32>
    %2 = tpu.matmul %1, %1, %cst {dimension_numbers = #tpu.dot_dimension_numbers<[1], [1], [0], [0], [0, 0, 1, 0], [], []>} : vector<4x256xf32>, vector<4x256xf32>, vector<4x4xf32> -> vector<4x4xf32>
    %cst_2 = arith.constant dense<0x7F800000> : vector<4xf32>
    %3 = vector.multi_reduction <minimumf>, %2, %cst_2 [1] : vector<4x4xf32> to vector<4xf32>
    %4 = vector.shape_cast %3 : vector<4xf32> to vector<4x1xf32>
    %5 = vector.broadcast %4 : vector<4x1xf32> to vector<4x4xf32>
    %6 = arith.subf %5, %2 : vector<4x4xf32>
    %7 = math.exp %6 : vector<4x4xf32>
    %cst_3 = arith.constant dense<0.000000e+00> : vector<4xf32>
    %8 = vector.multi_reduction <add>, %7, %cst_3 [1] : vector<4x4xf32> to vector<4xf32>
    %9 = vector.shape_cast %8 : vector<4xf32> to vector<4x1xf32>
    %10 = vector.broadcast %9 : vector<4x1xf32> to vector<4x4xf32>
    %11 = arith.divf %7, %10 : vector<4x4xf32>
    %cst_4 = arith.constant dense<0.000000e+00> : vector<4x256xf32>
    %12 = tpu.matmul %11, %1, %cst_4 {dimension_numbers = #tpu.dot_dimension_numbers<[1], [0], [0], [1], [0, 0, 1, 1], [], []>} : vector<4x4xf32>, vector<4x256xf32>, vector<4x256xf32> -> vector<4x256xf32>
    %c0_5 = arith.constant 0 : index
    %13 = memref.load %arg1[%c0_5] : memref<1xf32, #tpu.memory_space<smem>>
    %14 = vector.broadcast %13 : f32 to vector<4x256xf32>
    %15 = arith.mulf %14, %12 : vector<4x256xf32>
    %16 = arith.addf %15, %1 : vector<4x256xf32>
    %c0_6 = arith.constant 0 : index
    %c0_7 = arith.constant 0 : index
    %c0_8 = arith.constant 0 : index
    %17 = vector.load %arg3[%c0_6, %c0_7, %c0_8] : memref<1x4x256xf32, #tpu.memory_space<vmem>>, vector<1x4x256xf32>
    %18 = vector.shape_cast %17 : vector<1x4x256xf32> to vector<4x256xf32>
    %19 = vector.shape_cast %16 : vector<4x256xf32> to vector<1x4x256xf32>
    tpu.vector_store %arg3[%c0_6, %c0_7, %c0_8], %19 {strides = array<i32>} : memref<1x4x256xf32, #tpu.memory_space<vmem>>, vector<1x4x256xf32>,
    return
  }
  func.func @transform_0(%arg0: i32) -> i32 {
    %c0_i32 = arith.constant 0 : i32
    %c0_i32_0 = arith.constant 0 : i32
    return %c0_i32 : i32
  }
  func.func @transform_1(%arg0: i32) -> (i32, i32, i32) {
    %c0_i32 = arith.constant 0 : i32
    %c0_i32_0 = arith.constant 0 : i32
    %c0_i32_1 = arith.constant 0 : i32
    return %arg0, %c0_i32, %c0_i32_0 : i32, i32, i32
  }
  func.func @transform_2(%arg0: i32) -> (i32, i32, i32) {
    %c0_i32 = arith.constant 0 : i32
    %c0_i32_0 = arith.constant 0 : i32
    %c0_i32_1 = arith.constant 0 : i32
    return %arg0, %c0_i32, %c0_i32_0 : i32, i32, i32
  }
}

</mosaic_0001>

<bundles_post_ra>
// kernel: cam_module.1
= control target key start
LH: loop header
LB: loop body
LE: loop exit
PB: predicated region body
PF: predicated region fallthrough
CT: control target
= control target key end

     0   :  { %s434_s11 = smov 0   ;;  %s458_s0 = inlined_call_operand.<no memory space> [shape: f32[1], index: 0, kind: input, shape index: {}]   ;;  %s459_s1 = inlined_call_operand.vmem [shape: f32[2,4,256], index: 1, kind: input, shape index: {}]   ;;  %s460_s2 = inlined_call_operand.vmem [shape: f32[2,4,256], index: 2, kind: output, shape index: {}]  }
   0x1   :  { %7 = sst [smem:[#allocation2]] %s458_s0 }
   0x2 LB: > { %s377_s12 = sadd.s32 4294967295, %s413_s11   ;;  %p381_p0 = scmp.ge.s32.totalorder %s413_s11, 1  ;;  %s413_s11 = sphi %s434_s11, %s13_s11  }
   0x3   : > { %p113_p1 = scmp.lt.s32.totalorder %s413_s11, 3 }
   0x5   : > { %p114_p2 = pnand %p381_p0, %p113_p1 }
   0x6   : > { %p135_p3 = scmp.lt.s32.totalorder (!%p114_p2), %s377_s12, 1  ;;  %s311_s16 = sld [smem:[#allocation2]] (!%p114_p2) }
   0x7   : > { %117 = sbr.rel (%p114_p2) target bundleno = 729 (0x2d9), region = 28 }
   0xc   : > { %s462_s12 = smov (!%p135_p3, %s377_s12), 1  ;;  %vm219_vm0 = vcmask 27648   ;;  %vm235_vm1 = vcmask 1043456   ;;  %v415_v10 = vmov 0.0   ;;  %vm231_vm2 = vcmask 31744  }
   0xd   : > { %s391_s0 = sshll.u32 %s462_s12, 3  ;;  %304 = vmatprep.mubr.f32.mxu1 %v415_v10  ;;  %v312_v14 = vstv %s311_s16 }
   0xe   : > { %s139_s15 = scalar_lea.vmem %s459_s1, %s391_s0  ;;  %s144_s19 = scalar_lea.vmem %s460_s2, %s391_s0 }
   0xf   : > { %v145_v0 = vld [vmem:[%s139_s15] sm:$0xff] }
  0x10   : > { %v147_v1 = vcombine.high %v145_v0, %v145_v0 }
  0x12   : > { %179 = vmatprep.subr.mxu0 %v147_v1  ;;  %213 = vmatprep.mubr.f32.mxu0 %v147_v1 }
  0x13   : > { %180 = vmatpush1.xpose.msra.mxu0 %v145_v0  ;;  %386 = vmatprep.subr.msk.mxu1 %vm235_vm1, %v147_v1 }
  0x14   : > { %387 = vmatpush1.msk.msra.mxu1 %vm235_vm1, %v145_v0 }
  0x16   : > { %214 = vmatmul.mubr.f32.vlgmr.msra.gmra.mxu0 %v145_v0 }
  0xd6   : > { %v215_v2 = vpop.f32.mrf.mxu0 }
  0xd7   : > { %v220_v3 = vsel %vm219_vm0, %v215_v2, inf }
  0xd8   : > { %221 = vmin.xlane.f32.xlu0 %v220_v3  ;;  %v217_v4 = vpop.f32.mrf.mxu0 }
 0x161   : > { %v222_v5 = vpop.xlane.xlu0 %221 }
 0x162   : > { %v223_v6 = vsub.f32 %v222_v5, %v215_v2 }
 0x164   : > { %v224_v7 = vmul.f32 1.442695, %v223_v6 }
 0x166   : > { %403 = vpow2.f32 %v224_v7 }
 0x173   : > { %v404_v8 = vpop.eup %403 }
 0x174   : > { %v226_v9 = vsel %vm219_vm0, %v404_v8, 0.0 }
 0x175   : > { %227 = vadd.xlane.f32.xlu0 %v226_v9 }
 0x1fe   : > { %v228_v11 = vpop.xlane.xlu0 %227 }
 0x1ff   : > { %405 = vrcp.f32 %v228_v11 }
 0x20c   : > { %v406_v12 = vpop.eup %405 }
 0x20d   : > { %v230_v13 = vmul.f32 %v406_v12, %v404_v8 }
 0x20f   : > { %388 = vmatmul.mubr.msk.f32.vlgmr.msra.gmra.mxu1 %vm231_vm2, %v230_v13 }
 0x2cf   : > { %v306_v15 = vpop.f32.mrf.mxu1 }
 0x2d0   : > { %v313_v16 = vmul.f32 %v312_v14, %v306_v15 }
 0x2d1   : > { %v308_v17 = vpop.f32.mrf.mxu1 }
 0x2d2   : > { %v314_v18 = vmul.f32 %v312_v14, %v308_v17  ;;  %v315_v19 = vadd.f32 %v313_v16, %v145_v0 }
 0x2d4   : > { %v316_v20 = vadd.f32 %v314_v18, %v147_v1 }
 0x2d6   : > { %v319_v21 = vcombine.low %v315_v19, %v316_v20 }
 0x2d8   : > { %321 = vst [vmem:[%s144_s19] sm:$0xff] %v319_v21 }
 0x2d9 PF: > { %s13_s11 = sadd.s32 1, %s413_s11  }
 0x2da   : > { %p10_p4 = scmp.ge.s32.totalorder %s13_s11, 4  }
 0x2dc   :  { %12 = sbr.rel (!%p10_p4) target bundleno = 2 (0x2), region = 58 }

</bundles_post_ra>
